<compile_context>
chip_gen: v7x
topology: tpu7x:2x2x1
jax: 0.10.0
libtpu: 0.0.40
codegen_flags: <defaults>
</compile_context>

<pallas_src>
import functools

import jax
import jax.numpy as jnp
from jax.experimental import pallas as pl
from jax.experimental.pallas import tpu as pltpu


def _round_up(a: int, b: int) -> int:
    return (a + b - 1) // b * b


def _quant_linear_kernel(x_ref, wq_ref, b_ref, o_ref, acc_ref, *,
                         scale, zero_point, compute_dtype):
    """Grid = (M tiles, N tiles, K tiles); K (reduction) is the last axis."""
    k = pl.program_id(2)

    @pl.when(k == 0)
    def _init():
        acc_ref[...] = jnp.zeros_like(acc_ref)

    # In-kernel dequant (VPU; overlaps with MXU slots): int8 -> compute dtype.
    w = (wq_ref[...].astype(jnp.float32) - zero_point) * scale
    w = w.astype(compute_dtype)

    # MXU matmul with f32 accumulation into VMEM scratch.
    acc_ref[...] += jnp.dot(x_ref[...], w, preferred_element_type=jnp.float32)

    @pl.when(k == pl.num_programs(2) - 1)
    def _finalize():
        # Bias is added exactly once, on the final K step.
        o_ref[...] = (acc_ref[...] + b_ref[...].astype(jnp.float32)).astype(o_ref.dtype)


def quant_linear(x, weight, bias, *, scale=0.1, zero_point=0,
                 compute_dtype=jnp.bfloat16, tm=None, tn=None, tk=None):
    """x: (B, K); weight: (N, K) PyTorch layout; bias: (N,). Returns (B, N) float32."""
    M, K = x.shape
    N, K2 = weight.shape
    assert K == K2
    assert bias.shape == (N,)

    itemsize = jnp.dtype(compute_dtype).itemsize
    row_align = 8 * (4 // itemsize)          # f32 -> 8, bf16 -> 16 (sublane packing)

    # Tile sizes: lane-dense N (multiple of 128), MXU-friendly M, big K tiles.
    if tm is None:
        tm = min(128, _round_up(M, row_align))
    if tn is None:
        tn = min(256, _round_up(N, 128))
    if tk is None:
        tk = min(512, _round_up(K, 128))

    M_pad, N_pad, K_pad = _round_up(M, tm), _round_up(N, tn), _round_up(K, tk)

    # --- glue (plain JAX, once per call): quantize weight to int8, transpose to (K, N) ---
    # round-half-to-even matches torch.quantize_per_tensor.
    w_q = jnp.clip(jnp.round(weight.astype(jnp.float32) / scale) + zero_point,
                   -128, 127).astype(jnp.int8)               # (N, K) int8
    w_q_t = w_q.T                                            # (K, N) int8

    # Zero padding is safe: padded K columns of x are 0, padded N columns are sliced away.
    x_p = jnp.pad(x.astype(compute_dtype), ((0, M_pad - M), (0, K_pad - K)))
    w_p = jnp.pad(w_q_t, ((0, K_pad - K), (0, N_pad - N)))
    b_p = jnp.pad(bias.astype(jnp.float32), (0, N_pad - N)).reshape(1, N_pad)

    # VMEM budget: double-buffered x / w(int8) / bias / out tiles + f32 accumulator.
    vmem_need = (2 * (tm * tk * itemsize + tk * tn * 1 + tn * 4 + tm * tn * 4)
                 + tm * tn * 4)
    vmem_limit = int(min(max(4 * vmem_need, 32 * 1024 * 1024), 48 * 1024 * 1024))

    kernel = functools.partial(_quant_linear_kernel,
                               scale=float(scale),
                               zero_point=float(zero_point),
                               compute_dtype=compute_dtype)

    grid = (M_pad // tm, N_pad // tn, K_pad // tk)

    out_p = pl.pallas_call(
        kernel,
        out_shape=jax.ShapeDtypeStruct((M_pad, N_pad), jnp.float32),
        grid_spec=pltpu.PrefetchScalarGridSpec(
            num_scalar_prefetch=0,
            grid=grid,
            in_specs=[
                pl.BlockSpec((tm, tk), lambda i, j, k: (i, k)),   # activations
                pl.BlockSpec((tk, tn), lambda i, j, k: (k, j)),   # int8 weight (K, N)
                pl.BlockSpec((1, tn), lambda i, j, k: (0, j)),    # bias row
            ],
            out_specs=pl.BlockSpec((tm, tn), lambda i, j, k: (i, j)),
            scratch_shapes=[pltpu.VMEM((tm, tn), jnp.float32)],   # f32 accumulator
        ),
        compiler_params=pltpu.CompilerParams(
            dimension_semantics=("parallel", "parallel", "arbitrary"),
            vmem_limit_bytes=vmem_limit,
        ),
    )(x_p, w_p, b_p)

    return out_p[:M, :N]


if __name__ == "__main__":
    key = jax.random.PRNGKey(0)
    kx, kw, kb = jax.random.split(key, 3)

    batch = 2
    in_features = 16
    out_features = 32

    # Deterministic synthetic "float_linear" parameters (shapes from nn.Linear).
    x = jax.random.normal(kx, (batch, in_features), dtype=jnp.float32)
    weight = jax.random.normal(kw, (out_features, in_features), dtype=jnp.float32) * 0.5
    bias = jax.random.normal(kb, (out_features,), dtype=jnp.float32) * 0.1

    # Pure-JAX reference of the module's semantics: fake-quantized weight, f32 linear.
    q = jnp.clip(jnp.round(weight / 0.1) + 0, -128, 127)
    w_dq = (q - 0).astype(jnp.float32) * 0.1
    ref = x @ w_dq.T + bias

    # Default (perf) path: bf16 MXU operands, f32 accumulation.
    out = jax.block_until_ready(quant_linear(x, weight, bias))
    assert out.shape == (batch, out_features)
    assert jnp.allclose(out, ref, atol=5e-2, rtol=5e-2), \
        float(jnp.max(jnp.abs(out - ref)))

    # Bit-faithful path: f32 MXU operands, tight tolerance vs the module semantics.
    out_f32 = jax.block_until_ready(
        quant_linear(x, weight, bias, compute_dtype=jnp.float32))
    assert jnp.allclose(out_f32, ref, atol=1e-5, rtol=1e-5), \
        float(jnp.max(jnp.abs(out_f32 - ref)))

    print("KERNEL_OK")
</pallas_src>

<mosaic_0001>
module attributes {stable_mosaic.version = 11 : i64} {
  func.func @_quant_linear_kernel(%arg0: i32, %arg1: i32, %arg2: i32, %arg3: memref<16x128xbf16, #tpu.memory_space<vmem>>, %arg4: memref<128x128xi8, #tpu.memory_space<vmem>>, %arg5: memref<1x128xf32, #tpu.memory_space<vmem>>, %arg6: memref<16x128xf32, #tpu.memory_space<vmem>>, %arg7: memref<16x128xf32, #tpu.memory_space<vmem>>) attributes {dimension_semantics = [#tpu.dimension_semantics<parallel>, #tpu.dimension_semantics<parallel>, #tpu.dimension_semantics<arbitrary>], iteration_bounds = array<i64: 1, 1, 1>, scalar_prefetch = 0 : i64, scratch_operands = 1 : i64, tpu.core_type = #tpu.core_type<tc>, window_params = [{transform_indices = @transform_0, window_bounds = array<i64: 16, 128>}, {transform_indices = @transform_1, window_bounds = array<i64: 128, 128>}, {transform_indices = @transform_2, window_bounds = array<i64: 1, 128>}, {transform_indices = @transform_3, window_bounds = array<i64: 16, 128>}]} {
    %c0_i32 = arith.constant 0 : i32
    %0 = arith.cmpi eq, %arg2, %c0_i32 : i32
    %1 = arith.extui %0 : i1 to i32
    %c0_i32_0 = arith.constant 0 : i32
    %2 = arith.cmpi ne, %1, %c0_i32_0 : i32
    scf.if %2 {
      %cst_12 = arith.constant 0.000000e+00 : f32
      %18 = vector.broadcast %cst_12 : f32 to vector<16x128xf32>
      %c0_13 = arith.constant 0 : index
      %c0_14 = arith.constant 0 : index
      %19 = vector.load %arg7[%c0_13, %c0_14] : memref<16x128xf32, #tpu.memory_space<vmem>>, vector<16x128xf32>
      tpu.vector_store %arg7[%c0_13, %c0_14], %18 {strides = array<i32>} : memref<16x128xf32, #tpu.memory_space<vmem>>, vector<16x128xf32>,
    } else {
    }
    %c0 = arith.constant 0 : index
    %c0_1 = arith.constant 0 : index
    %3 = vector.load %arg4[%c0, %c0_1] : memref<128x128xi8, #tpu.memory_space<vmem>>, vector<128x128xi8>
    %4 = arith.sitofp %3 : vector<128x128xi8> to vector<128x128xf32>
    %cst = arith.constant 0.000000e+00 : f32
    %5 = vector.broadcast %cst : f32 to vector<128x128xf32>
    %6 = arith.subf %4, %5 : vector<128x128xf32>
    %cst_2 = arith.constant 1.000000e-01 : f32
    %7 = vector.broadcast %cst_2 : f32 to vector<128x128xf32>
    %8 = arith.mulf %6, %7 : vector<128x128xf32>
    %9 = arith.truncf %8 : vector<128x128xf32> to vector<128x128xbf16>
    %c0_3 = arith.constant 0 : index
    %c0_4 = arith.constant 0 : index
    %10 = vector.load %arg7[%c0_3, %c0_4] : memref<16x128xf32, #tpu.memory_space<vmem>>, vector<16x128xf32>
    %c0_5 = arith.constant 0 : index
    %c0_6 = arith.constant 0 : index
    %11 = vector.load %arg3[%c0_5, %c0_6] : memref<16x128xbf16, #tpu.memory_space<vmem>>, vector<16x128xbf16>
    %cst_7 = arith.constant dense<0.000000e+00> : vector<16x128xf32>
    %12 = tpu.matmul %11, %9, %cst_7 {dimension_numbers = #tpu.dot_dimension_numbers<[1], [0], [0], [1], [0, 0, 1, 1], [], []>} : vector<16x128xbf16>, vector<128x128xbf16>, vector<16x128xf32> -> vector<16x128xf32>
    %13 = arith.addf %10, %12 : vector<16x128xf32>
    %c0_8 = arith.constant 0 : index
    %c0_9 = arith.constant 0 : index
    %14 = vector.load %arg7[%c0_8, %c0_9] : memref<16x128xf32, #tpu.memory_space<vmem>>, vector<16x128xf32>
    tpu.vector_store %arg7[%c0_8, %c0_9], %13 {strides = array<i32>} : memref<16x128xf32, #tpu.memory_space<vmem>>, vector<16x128xf32>,
    %c0_i32_10 = arith.constant 0 : i32
    %15 = arith.cmpi eq, %arg2, %c0_i32_10 : i32
    %16 = arith.extui %15 : i1 to i32
    %c0_i32_11 = arith.constant 0 : i32
    %17 = arith.cmpi ne, %16, %c0_i32_11 : i32
    scf.if %17 {
      %c0_12 = arith.constant 0 : index
      %c0_13 = arith.constant 0 : index
      %18 = vector.load %arg7[%c0_12, %c0_13] : memref<16x128xf32, #tpu.memory_space<vmem>>, vector<16x128xf32>
      %c0_14 = arith.constant 0 : index
      %c0_15 = arith.constant 0 : index
      %19 = vector.load %arg5[%c0_14, %c0_15] : memref<1x128xf32, #tpu.memory_space<vmem>>, vector<1x128xf32>
      %20 = vector.broadcast %19 : vector<1x128xf32> to vector<16x128xf32>
      %21 = arith.addf %18, %20 : vector<16x128xf32>
      %c0_16 = arith.constant 0 : index
      %c0_17 = arith.constant 0 : index
      %22 = vector.load %arg6[%c0_16, %c0_17] : memref<16x128xf32, #tpu.memory_space<vmem>>, vector<16x128xf32>
      tpu.vector_store %arg6[%c0_16, %c0_17], %21 {strides = array<i32>} : memref<16x128xf32, #tpu.memory_space<vmem>>, vector<16x128xf32>,
    } else {
    }
    return
  }
  func.func @transform_0(%arg0: i32, %arg1: i32, %arg2: i32) -> (i32, i32) {
    %c0_i32 = arith.constant 0 : i32
    return %arg0, %arg2 : i32, i32
  }
  func.func @transform_1(%arg0: i32, %arg1: i32, %arg2: i32) -> (i32, i32) {
    %c0_i32 = arith.constant 0 : i32
    return %arg2, %arg1 : i32, i32
  }
  func.func @transform_2(%arg0: i32, %arg1: i32, %arg2: i32) -> (i32, i32) {
    %c0_i32 = arith.constant 0 : i32
    %c0_i32_0 = arith.constant 0 : i32
    return %c0_i32, %arg1 : i32, i32
  }
  func.func @transform_3(%arg0: i32, %arg1: i32, %arg2: i32) -> (i32, i32) {
    %c0_i32 = arith.constant 0 : i32
    return %arg0, %arg1 : i32, i32
  }
}

</mosaic_0001>

<bundles_post_ra>
// kernel: tpu_custom_call.1
= control target key start
LH: loop header
LB: loop body
LE: loop exit
PB: predicated region body
PF: predicated region fallthrough
CT: control target
= control target key end

     0   :  { %8 = vsyncpa [#allocation4], 0  ;;  %s395_s0 = inlined_call_operand.hbm [shape: bf16[16,128], index: 0, kind: input, shape index: {}]   ;;  %s396_s1 = inlined_call_operand.hbm [shape: s8[128,128], index: 1, kind: input, shape index: {}]   ;;  %s397_s2 = inlined_call_operand.vmem [shape: f32[1,128], index: 2, kind: input, shape index: {}]   ;;  %s398_s3 = inlined_call_operand.hbm [shape: f32[16,128], index: 3, kind: output, shape index: {}]  }
   0x1   :  { %9 = vsyncpa [#allocation7], 0 }
   0x2   :  { %10 = vsyncpa [#allocation5], 0  ;;  %s312_s12 = smov [#allocation3]   ;;  %s240_s16 = scalar_lea.hbm %s395_s0, 128 }
   0x3   :  { %s16_s13 = sshll.u32 %s312_s12, 4  ;;  %p241_p0 = scmp.ne.s32.totalorder %s395_s0, %s240_s16  ;;  %s17_s13 = int_to_ptr.vmem [resolvable:$true] %s16_s13 }
   0x4   :  { %p244_p1 = scmp.lt.u32.totalorder %s240_s16, %s395_s0 }
   0x6   :  { %p246_p2 = pnand %p244_p1, %p241_p0 }
   0x8   :  { %249 = shalt.err (!%p246_p2)
}
   0x9   :  { %s250_s21 = scalar_lea.vmem %s17_s13, 128  ;;  %p255_p4 = scmp.lt.s32.totalorder %s17_s13, %s17_s13 }
   0xa   :  { %p251_p3 = scmp.ne.s32.totalorder %s17_s13, %s250_s21  ;;  %p256_p5 = scmp.lt.s32.totalorder %s250_s21, %s250_s21 }
   0xc   :  { %p257_p6 = por %p256_p5, %p255_p4 }
   0xe   :  { %p258_p7 = pnand %p257_p6, %p251_p3 }
  0x10   :  { %261 = shalt.err (!%p258_p7)
}
  0x11   :  { %s313_s22 = smov 64   ;;  %s314_s23 = smov 4  }
  0x12   :  { %22 = dma.hbm_to_vmem [thread:$0]  %s395_s0, 128, %s17_s13, [#allocation4], %s313_s22, %s313_s22, %s314_s23  }
  0x13   :  { %s315_s26 = smov [#allocation6]   ;;  %s262_s30 = scalar_lea.hbm %s396_s1, 512 }
  0x14   :  { %s28_s27 = sshll.u32 %s315_s26, 4  ;;  %p263_p8 = scmp.ne.s32.totalorder %s396_s1, %s262_s30  ;;  %s29_s27 = int_to_ptr.vmem [resolvable:$true] %s28_s27 }
  0x15   :  { %p266_p9 = scmp.lt.u32.totalorder %s262_s30, %s396_s1 }
  0x17   :  { %p268_p10 = pnand %p266_p9, %p263_p8 }
  0x19   :  { %271 = shalt.err (!%p268_p10)
}
  0x1a   :  { %s272_s8 = scalar_lea.vmem %s29_s27, 512  ;;  %p277_p12 = scmp.lt.s32.totalorder %s29_s27, %s29_s27 }
  0x1b   :  { %p273_p11 = scmp.ne.s32.totalorder %s29_s27, %s272_s8  ;;  %p278_p13 = scmp.lt.s32.totalorder %s272_s8, %s272_s8 }
  0x1d   :  { %p279_p0 = por %p278_p13, %p277_p12 }
  0x1f   :  { %p280_p1 = pnand %p279_p0, %p273_p11 }
  0x21   :  { %283 = shalt.err (!%p280_p1)
}
  0x22   :  { %s316_s0 = smov 128   ;;  %s317_s9 = smov 8  }
  0x23   :  { %34 = dma.hbm_to_vmem [thread:$0]  %s396_s1, 512, %s29_s27, [#allocation7], %s316_s0, %s316_s0, %s317_s9  }
  0x24   :  { %306 = dma.done.wait [#allocation4], 128  }
  0x25   :  { %307 = vsyncadd [#allocation4], 4294967168 }
  0x26   :  { %308 = dma.done.wait [#allocation7], 512  }
  0x27   :  { %309 = vsyncadd [#allocation7], 4294966784  ;;  %v318_v0 = vmov 0.0   ;;  %vm319_vm0 = vmmov 0   ;;  %v50_v1 = vld [vmem:[#allocation6] sm:$0xff]  ;;  %v51_v2 = vld [vmem:[#allocation6 + $0x8] sm:$0xff] }
  0x28   :  { %210 = vmatprep.subr.bf16.mxu0 %v318_v0  ;;  %226 = vmatprep.mubr.msk.bf16.mxu0 %vm319_vm0, %v318_v0  ;;  %v54_v3 = vunpack.c.0.s8 %v50_v1  ;;  %v55_v4 = vunpack.c.1.s8 %v50_v1  ;;  %v56_v5 = vunpack.c.2.s8 %v50_v1  ;;  %v57_v6 = vunpack.c.3.s8 %v50_v1  ;;  %v52_v16 = vld [vmem:[#allocation6 + $0x10] sm:$0xff]  ;;  %v53_v37 = vld [vmem:[#allocation6 + $0x18] sm:$0xff]  ;;  %s320_s13 = smov [#allocation8]  }
  0x29   :  { %v58_v7 = vunpack.c.0.s8 %v51_v2  ;;  %v59_v8 = vunpack.c.1.s8 %v51_v2  ;;  %v60_v14 = vunpack.c.2.s8 %v51_v2  ;;  %v61_v15 = vunpack.c.3.s8 %v51_v2  ;;  %v239_v61 = vld [vmem:[#allocation3] sm:$0xff]   ;;  %s186_s14 = sshll.u32 %s320_s13, 4  ;;  %s187_s14 = int_to_ptr.vmem [resolvable:$true] %s186_s14 }
  0x2a   :  { %v70_v9 = vcvt.s32.f32 %v54_v3  ;;  %v71_v10 = vcvt.s32.f32 %v55_v4  ;;  %v72_v11 = vcvt.s32.f32 %v56_v5  ;;  %v73_v12 = vcvt.s32.f32 %v57_v6  ;;  %v200_v62 = vld [vmem:[%s397_s2] ss:$0 sm:$0xff]  ;;  %s284_s15 = scalar_lea.vmem %s187_s14, 256  ;;  %p289_p3 = scmp.lt.s32.totalorder %s187_s14, %s187_s14 }
  0x2b   :  { %v74_v13 = vcvt.s32.f32 %v58_v7  ;;  %v75_v20 = vcvt.s32.f32 %v59_v8  ;;  %v76_v23 = vcvt.s32.f32 %v60_v14  ;;  %v77_v24 = vcvt.s32.f32 %v61_v15  ;;  %p285_p2 = scmp.ne.s32.totalorder %s187_s14, %s284_s15  ;;  %p290_p4 = scmp.lt.s32.totalorder %s284_s15, %s284_s15 }
  0x2c   :  { %v86_v17 = vmul.f32 0.1, %v70_v9  ;;  %v87_v18 = vmul.f32 0.1, %v71_v10  ;;  %v88_v19 = vmul.f32 0.1, %v72_v11  ;;  %v62_v25 = vunpack.c.0.s8 %v52_v16 }
  0x2d   :  { %v89_v21 = vmul.f32 0.1, %v73_v12  ;;  %v90_v27 = vmul.f32 0.1, %v74_v13  ;;  %v91_v28 = vmul.f32 0.1, %v75_v20  ;;  %v63_v29 = vunpack.c.1.s8 %v52_v16  ;;  %p291_p5 = por %p290_p4, %p289_p3 }
  0x2e   :  { %v102_v22 = vpack.c.bf16 %v87_v18, %v86_v17  ;;  %v92_v30 = vmul.f32 0.1, %v76_v23  ;;  %v93_v31 = vmul.f32 0.1, %v77_v24  ;;  %v78_v32 = vcvt.s32.f32 %v62_v25 }
  0x2f   :  { %v103_v26 = vpack.c.bf16 %v89_v21, %v88_v19  ;;  %v104_v33 = vpack.c.bf16 %v91_v28, %v90_v27  ;;  %v79_v34 = vcvt.s32.f32 %v63_v29  ;;  %v64_v35 = vunpack.c.2.s8 %v52_v16  ;;  %p292_p6 = pnand %p291_p5, %p285_p2 }
  0x30   :  { %211 = vmatpush3.bf16.msra.mxu0 %v102_v22  ;;  %v65_v36 = vunpack.c.3.s8 %v52_v16  ;;  %v105_v38 = vpack.c.bf16 %v93_v31, %v92_v30  ;;  %v94_v39 = vmul.f32 0.1, %v78_v32  ;;  %v66_v40 = vunpack.c.0.s8 %v53_v37 }
  0x31   :  { %212 = vmatprep.subr.bf16.mxu0 %v318_v0  ;;  %v95_v41 = vmul.f32 0.1, %v79_v34  ;;  %v80_v42 = vcvt.s32.f32 %v64_v35  ;;  %v67_v44 = vunpack.c.1.s8 %v53_v37  ;;  %v68_v46 = vunpack.c.2.s8 %v53_v37 }
  0x32   :  { %v81_v43 = vcvt.s32.f32 %v65_v36  ;;  %v82_v45 = vcvt.s32.f32 %v66_v40  ;;  %v69_v47 = vunpack.c.3.s8 %v53_v37 }
  0x33   :  { %v106_v48 = vpack.c.bf16 %v95_v41, %v94_v39  ;;  %v96_v49 = vmul.f32 0.1, %v80_v42  ;;  %v83_v51 = vcvt.s32.f32 %v67_v44  ;;  %v84_v52 = vcvt.s32.f32 %v68_v46 }
  0x34   :  { %213 = vmatpush3.bf16.msra.mxu0 %v103_v26  ;;  %v97_v50 = vmul.f32 0.1, %v81_v43  ;;  %v98_v54 = vmul.f32 0.1, %v82_v45  ;;  %v85_v56 = vcvt.s32.f32 %v69_v47 }
  0x35   :  { %214 = vmatprep.subr.bf16.mxu0 %v318_v0  ;;  %v99_v55 = vmul.f32 0.1, %v83_v51  ;;  %v100_v58 = vmul.f32 0.1, %v84_v52 }
  0x36   :  { %v107_v53 = vpack.c.bf16 %v97_v50, %v96_v49  ;;  %v101_v59 = vmul.f32 0.1, %v85_v56 }
  0x37   :  { %v108_v57 = vpack.c.bf16 %v99_v55, %v98_v54 }
  0x38   :  { %215 = vmatpush3.bf16.msra.mxu0 %v104_v33  ;;  %v109_v60 = vpack.c.bf16 %v101_v59, %v100_v58 }
  0x39   :  { %216 = vmatprep.subr.bf16.mxu0 %v318_v0 }
  0x3c   :  { %217 = vmatpush3.bf16.msra.mxu0 %v105_v38 }
  0x3d   :  { %218 = vmatprep.subr.bf16.mxu0 %v318_v0 }
  0x40   :  { %219 = vmatpush3.bf16.msra.mxu0 %v106_v48 }
  0x41   :  { %220 = vmatprep.subr.bf16.mxu0 %v318_v0 }
  0x44   :  { %221 = vmatpush3.bf16.msra.mxu0 %v107_v53 }
  0x45   :  { %222 = vmatprep.subr.bf16.mxu0 %v318_v0 }
  0x48   :  { %223 = vmatpush3.bf16.msra.mxu0 %v108_v57 }
  0x49   :  { %224 = vmatprep.subr.bf16.mxu0 %v318_v0 }
  0x4c   :  { %225 = vmatpush3.bf16.msra.mxu0 %v109_v60 }
  0x4f   :  { %227 = vmatmul.mubr.bf16.vlgmr.msra.gmra.mrb[0].mxu0 %v239_v61 }
 0x122   :  { %v154_v63 = vpop.f32.mrb[0].mxu0 }
 0x123   :  { %v177_v1 = vadd.f32 %v200_v62, %v154_v63  ;;  %v228_v2 = vpop.f32.mrb[1].mxu0 }
 0x124   :  { %v157_v3 = vpop.f32.mrb[2].mxu0 }
 0x125   :  { %179 = vst [vmem:[#allocation8] sm:$0xff] %v177_v1  ;;  %v178_v4 = vadd.f32 %v200_v62, %v157_v3  ;;  %v229_v5 = vpop.f32.mrb[3].mxu0 }
 0x127   :  { %180 = vst [vmem:[#allocation8 + $0x8] sm:$0xff] %v178_v4 }
 0x128   :  { %295 = shalt.err (!%p292_p6)
}
 0x129   :  { %s296_s17 = scalar_lea.hbm %s398_s3, 256 }
 0x12a   :  { %p297_p7 = scmp.ne.s32.totalorder %s398_s3, %s296_s17  ;;  %p300_p8 = scmp.lt.u32.totalorder %s296_s17, %s398_s3 }
 0x12c   :  { %p302_p9 = pnand %p300_p8, %p297_p7 }
 0x12e   :  { %305 = shalt.err (!%p302_p9)
}
 0x12f   :  { %192 = dma.vmem_to_hbm [thread:$0]  %s187_s14, 256, %s398_s3, [#allocation5], %s316_s0, %s316_s0, %s317_s9  }
 0x130   :  { %310 = dma.done.wait [#allocation5], 256  }
 0x131   :  { %311 = vsyncadd [#allocation5], 4294967040 }
 0x132   :  { %196 = vsyncpa [#allocation4], 1 }
 0x133   :  { %197 = vsyncpa [#allocation7], 1 }
 0x134   :  { %198 = vsyncpa [#allocation5], 1 }

</bundles_post_ra>
